<compile_context>
chip_gen: v5e
topology: v5e:2x2
jax: 0.10.0
libtpu: 0.0.40
codegen_flags: <defaults>
</compile_context>

<pallas_src>
import functools

import jax
import jax.numpy as jnp
from jax.experimental import pallas as pl
from jax.experimental.pallas import tpu as pltpu


def _round_up(x, m):
    return (x + m - 1) // m * m


def _pick_row_tile(h, w, requested=None):
    """Rows of output produced per grid step.

    Prefers lane-dense output blocks (row_tile*w a multiple of 128) that are reasonably
    large (>= 512 lanes); must divide h.  Falls back to a single tile (block == full
    array, always layout-legal) if no aligned divisor exists.
    """
    if requested is not None and h % requested == 0:
        return requested
    divisors = [d for d in range(1, h + 1) if h % d == 0]
    aligned = [d for d in divisors if (d * w) % 128 == 0]
    if not aligned:
        return h
    big = [d for d in aligned if d * w >= 512]
    return min(big) if big else max(aligned)


def _adjconv_kernel(weff_ref, bias_ref, mask_ref, x_ref, out_ref, *, ksize, width, tn):
    """One (batch, row-tile) grid step.

    weff_ref : (K*K, O, C)  f32   folded dynamic filters: wc[o,c] * softmax_filter[c, tap]
    bias_ref : (O, 1)       f32   channel_combine bias
    mask_ref : (K, tn)      bf16  0/1 horizontal edge masks (one per kx tap)
    x_ref    : (C, chunk)   bf16  flattened image rows of this tile incl. vertical halo
    out_ref  : (O, tn)      f32   row_tile * W output pixels (lane-dense, junk-free)
    """
    o = out_ref.shape[0]
    acc = jnp.zeros((o, tn), jnp.float32)
    for ky in range(ksize):
        for kx in range(ksize):
            tap_idx = ky * ksize + kx
            off = ky * width + kx                      # static lane offset into the chunk
            tap = x_ref[:, off:off + tn]               # (C, tn) shifted window
            if kx != ksize // 2:
                # Zero the lanes where this horizontal tap sits in the 'same' padding:
                # the flat row layout has no width padding, so those lanes hold wrapped
                # pixels from the neighbouring row.
                tap = tap * mask_ref[kx:kx + 1, :]
            # Small accumulating MXU matmul, f32 accumulation.  No 9x stacked im2col
            # operand is ever materialized in VMEM.
            acc = acc + jnp.dot(weff_ref[tap_idx], tap.astype(jnp.float32),
                                preferred_element_type=jnp.float32)
    out_ref[...] = (acc + bias_ref[...]).astype(out_ref.dtype)


def adjustable_convolution_2d(image_feat, temp_feat, params, *,
                              kernel_size=3, stride=(1, 1), padding=None,
                              softmax_temp=100.0, row_tile=None,
                              stream_dtype=jnp.bfloat16):
    w1, b1, w2, b2, wc, bc = (params[n] for n in ("w1", "b1", "w2", "b2", "wc", "bc"))

    bs, c, h, w = image_feat.shape
    k = kernel_size
    kk = k * k
    pw = k // 2
    if padding is None:
        padding = (pw, pw)
    o = wc.shape[0]

    assert stride == (1, 1), "only stride (1,1) implemented (module default)"
    assert k % 2 == 1 and padding == (pw, pw), \
        "only 'same'-size convolution implemented (module default kernel=3, padding=(1,1))"
    # The PyTorch forward's .view(bs, output_dim, h, w) implicitly requires this:
    assert o == c, "AdjustableConvolution2d forward requires output_dim == input_dim"

    # ---- dynamic depthwise filters folded with the 1x1 combine (tiny; plain JAX) -------------
    hid = temp_feat @ w1 + b1                                       # (bs, S)
    logits = (hid @ w2 + b2) / softmax_temp                         # (bs, C*K*K) channel-major
    filt = jax.nn.softmax(logits.reshape(bs, c, kk), axis=-1)       # (bs, C, K*K)
    weff = jnp.einsum('oc,bcf->bfoc', wc, filt).astype(jnp.float32)  # (bs, K*K, O, C)
    bias = bc.reshape(o, 1).astype(jnp.float32)

    # ---- tiling -------------------------------------------------------------------------------
    rt = _pick_row_tile(h, w, row_tile)
    n_tiles = h // rt
    tn = rt * w                                         # output lanes per grid step
    chunk = _round_up(tn + (k - 1) * w + (k - 1), 16)   # input lanes per step (incl. halo)

    # ---- flatten rows (no width padding), vertical 'same' pad, per-tile overlapping windows --
    total = (n_tiles - 1) * tn + chunk
    xpad = jnp.pad(image_feat, ((0, 0), (0, 0), (pw, pw), (0, 0)))     # (bs, C, H+2*pw, W)
    flat = xpad.reshape(bs, c, (h + 2 * pw) * w).astype(stream_dtype)
    lead = pw                                           # guard zeros for column underflow
    tail = max(total - (lead + (h + 2 * pw) * w), 0)
    flat = jnp.pad(flat, ((0, 0), (0, 0), (lead, tail)))
    # overlapping row-tile windows (halo duplication ~ chunk/tn - 1; one fused XLA pass)
    xwin = jnp.stack([flat[:, :, r * tn:r * tn + chunk] for r in range(n_tiles)],
                     axis=1)                                            # (bs, n_tiles, C, chunk)

    # ---- 0/1 masks for the horizontal edge taps (column x valid iff 0 <= x+kx-pw < W) --------
    col = jnp.arange(tn, dtype=jnp.int32) % w
    masks = jnp.stack(
        [((col >= (pw - kx)) & (col <= (w - 1 + pw - kx))) for kx in range(k)],
        axis=0).astype(stream_dtype)                                    # (K, tn)

    kernel = functools.partial(_adjconv_kernel, ksize=k, width=w, tn=tn)

    # VMEM budget: double-buffered blocks + in-kernel temporaries, clamped to 48 MiB so the
    # pipeline always fits v7x's 64 MiB physical VMEM with headroom.
    esz = jnp.dtype(stream_dtype).itemsize
    blocks = 2 * (kk * o * c * 4 + o * 4 + k * tn * esz + c * chunk * esz + o * tn * 4)
    temps = kk * c * tn * esz + 2 * c * tn * 4 + 2 * o * tn * 4 + (1 << 16)
    vmem_limit = int(min(max(32 << 20, 2 * (blocks + temps)), 48 << 20))

    out_flat = pl.pallas_call(
        kernel,
        out_shape=jax.ShapeDtypeStruct((bs, o, h * w), jnp.float32),
        grid=(bs, n_tiles),
        in_specs=[
            pl.BlockSpec((None, kk, o, c), lambda b, r: (b, 0, 0, 0)),        # W_eff (per batch)
            pl.BlockSpec((o, 1), lambda b, r: (0, 0)),                        # combine bias
            pl.BlockSpec((k, tn), lambda b, r: (0, 0)),                       # edge masks
            pl.BlockSpec((None, None, c, chunk), lambda b, r: (b, r, 0, 0)),  # image row windows
        ],
        out_specs=pl.BlockSpec((None, o, tn), lambda b, r: (b, 0, r)),
        compiler_params=pltpu.CompilerParams(
            dimension_semantics=("parallel", "parallel"),
            vmem_limit_bytes=vmem_limit),
    )(weff, bias, masks, xwin)

    # trailing-axis reshape only -- no junk columns to slice away, no extra HBM pass
    return out_flat.reshape(bs, o, h, w).astype(image_feat.dtype)


def reference_forward(image_feat, temp_feat, params, kernel_size=3, padding=(1, 1),
                      softmax_temp=100.0):
    """Pure-JAX reference mirroring the PyTorch module (f32 throughout)."""
    w1, b1, w2, b2, wc, bc = (params[n] for n in ("w1", "b1", "w2", "b2", "wc", "bc"))
    bs, c, h, w = image_feat.shape
    k = kernel_size
    hid = temp_feat @ w1 + b1
    logits = (hid @ w2 + b2) / softmax_temp
    filt = jax.nn.softmax(logits.reshape(bs, c, k * k), axis=-1)
    xp = jnp.pad(image_feat, ((0, 0), (0, 0), (padding[0], padding[0]),
                              (padding[1], padding[1])))
    taps = [xp[:, :, ky:ky + h, kx:kx + w] for ky in range(k) for kx in range(k)]
    unf = jnp.stack(taps, axis=2)                                        # (bs, c, k*k, h, w)
    dw = jnp.einsum('bcf,bcfhw->bchw', filt, unf, precision="highest")
    return jnp.einsum('oc,bchw->bohw', wc, dw, precision="highest") + bc[None, :, None, None]


if __name__ == "__main__":
    bs, C, H, W = 2, 8, 16, 16
    O = 8            # output_dim (must equal input_dim per the module's .view())
    T = 16           # template_input_dim
    S = 32           # squeeze_dim
    K = 3            # kernel_size

    key = jax.random.PRNGKey(0)
    keys = jax.random.split(key, 8)
    image_feat = jax.random.normal(keys[0], (bs, C, H, W), jnp.float32)
    temp_feat = jax.random.normal(keys[1], (bs, T), jnp.float32)

    # Deterministic synthetic parameters (shapes match the PyTorch module's layers).
    params = dict(
        w1=0.2 * jax.random.normal(keys[2], (T, S), jnp.float32),          # template_dim_red
        b1=0.1 * jax.random.normal(keys[3], (S,), jnp.float32),
        w2=0.2 * jax.random.normal(keys[4], (S, C * K * K), jnp.float32),  # depth_filter_lin
        b2=0.1 * jax.random.normal(keys[5], (C * K * K,), jnp.float32),
        wc=0.2 * jax.random.normal(keys[6], (O, C), jnp.float32),          # channel_combine 1x1
        bc=0.1 * jax.random.normal(keys[7], (O,), jnp.float32),
    )

    ref = reference_forward(image_feat, temp_feat, params, kernel_size=K, softmax_temp=100.0)
    # reference with the image quantised exactly like the kernel's bf16 stream
    ref_q = reference_forward(image_feat.astype(jnp.bfloat16).astype(jnp.float32),
                              temp_feat, params, kernel_size=K, softmax_temp=100.0)

    for rt in (8, None):   # explicit 2-tile run + auto-picked tile (single, lane-dense)
        fn = jax.jit(functools.partial(adjustable_convolution_2d, kernel_size=K,
                                       softmax_temp=100.0, row_tile=rt))
        out = jax.block_until_ready(fn(image_feat, temp_feat, params))
        assert out.shape == (bs, O, H, W)
        # tight check of the kernel logic (same bf16-quantised image input)
        assert jnp.allclose(out, ref_q, rtol=5e-3, atol=5e-3), \
            ("logic", rt, float(jnp.max(jnp.abs(out - ref_q))))
        # semantic check vs. the exact f32 module output (tolerance for the bf16 image stream)
        assert jnp.allclose(out, ref, rtol=3e-2, atol=3e-2), \
            ("semantics", rt, float(jnp.max(jnp.abs(out - ref))))

    print("KERNEL_OK")
</pallas_src>

<mosaic_0001>
module attributes {stable_mosaic.version = 11 : i64} {
  func.func @_adjconv_kernel(%arg0: i32, %arg1: i32, %arg2: memref<1x9x8x8xf32, #tpu.memory_space<vmem>>, %arg3: memref<8x1xf32, #tpu.memory_space<vmem>>, %arg4: memref<3x128xbf16, #tpu.memory_space<vmem>>, %arg5: memref<1x1x8x176xbf16, #tpu.memory_space<vmem>>, %arg6: memref<1x8x128xf32, #tpu.memory_space<vmem>>) attributes {dimension_semantics = [#tpu.dimension_semantics<parallel>, #tpu.dimension_semantics<parallel>], iteration_bounds = array<i64: 2, 2>, scalar_prefetch = 0 : i64, scratch_operands = 0 : i64, tpu.core_type = #tpu.core_type<tc>, window_params = [{transform_indices = @transform_0, window_bounds = array<i64: 1, 9, 8, 8>}, {pipeline_mode = #tpu.pipeline_mode<synchronous>, transform_indices = @transform_1, window_bounds = array<i64: 8, 1>}, {pipeline_mode = #tpu.pipeline_mode<synchronous>, transform_indices = @transform_2, window_bounds = array<i64: 3, 128>}, {transform_indices = @transform_3, window_bounds = array<i64: 1, 1, 8, 176>}, {transform_indices = @transform_4, window_bounds = array<i64: 1, 8, 128>}]} {
    %cst = arith.constant 0.000000e+00 : f32
    %0 = vector.broadcast %cst : f32 to vector<8x128xf32>
    %c0 = arith.constant 0 : index
    %c0_0 = arith.constant 0 : index
    %c0_1 = arith.constant 0 : index
    %c0_2 = arith.constant 0 : index
    %1 = vector.load %arg5[%c0, %c0_0, %c0_1, %c0_2] : memref<1x1x8x176xbf16, #tpu.memory_space<vmem>>, vector<1x1x8x128xbf16>
    %2 = vector.shape_cast %1 : vector<1x1x8x128xbf16> to vector<8x128xbf16>
    %c0_3 = arith.constant 0 : index
    %c0_4 = arith.constant 0 : index
    %3 = vector.load %arg4[%c0_3, %c0_4] : memref<3x128xbf16, #tpu.memory_space<vmem>>, vector<1x128xbf16>
    %4 = vector.broadcast %3 : vector<1x128xbf16> to vector<8x128xbf16>
    %5 = arith.mulf %2, %4 : vector<8x128xbf16>
    %c0_5 = arith.constant 0 : index
    %c0_6 = arith.constant 0 : index
    %c0_7 = arith.constant 0 : index
    %c0_8 = arith.constant 0 : index
    %6 = vector.load %arg2[%c0_5, %c0_6, %c0_7, %c0_8] : memref<1x9x8x8xf32, #tpu.memory_space<vmem>>, vector<1x1x8x8xf32>
    %7 = vector.shape_cast %6 : vector<1x1x8x8xf32> to vector<8x8xf32>
    %8 = arith.extf %5 : vector<8x128xbf16> to vector<8x128xf32>
    %cst_9 = arith.constant dense<0.000000e+00> : vector<8x128xf32>
    %9 = tpu.matmul %7, %8, %cst_9 {dimension_numbers = #tpu.dot_dimension_numbers<[1], [0], [0], [1], [0, 0, 1, 1], [], []>} : vector<8x8xf32>, vector<8x128xf32>, vector<8x128xf32> -> vector<8x128xf32>
    %10 = arith.addf %0, %9 : vector<8x128xf32>
    %c0_10 = arith.constant 0 : index
    %c0_11 = arith.constant 0 : index
    %c0_12 = arith.constant 0 : index
    %c1 = arith.constant 1 : index
    %11 = vector.load %arg5[%c0_10, %c0_11, %c0_12, %c1] : memref<1x1x8x176xbf16, #tpu.memory_space<vmem>>, vector<1x1x8x128xbf16>
    %12 = vector.shape_cast %11 : vector<1x1x8x128xbf16> to vector<8x128xbf16>
    %c0_13 = arith.constant 0 : index
    %c1_14 = arith.constant 1 : index
    %c0_15 = arith.constant 0 : index
    %c0_16 = arith.constant 0 : index
    %13 = vector.load %arg2[%c0_13, %c1_14, %c0_15, %c0_16] : memref<1x9x8x8xf32, #tpu.memory_space<vmem>>, vector<1x1x8x8xf32>
    %14 = vector.shape_cast %13 : vector<1x1x8x8xf32> to vector<8x8xf32>
    %15 = arith.extf %12 : vector<8x128xbf16> to vector<8x128xf32>
    %cst_17 = arith.constant dense<0.000000e+00> : vector<8x128xf32>
    %16 = tpu.matmul %14, %15, %cst_17 {dimension_numbers = #tpu.dot_dimension_numbers<[1], [0], [0], [1], [0, 0, 1, 1], [], []>} : vector<8x8xf32>, vector<8x128xf32>, vector<8x128xf32> -> vector<8x128xf32>
    %17 = arith.addf %10, %16 : vector<8x128xf32>
    %c0_18 = arith.constant 0 : index
    %c0_19 = arith.constant 0 : index
    %c0_20 = arith.constant 0 : index
    %c2 = arith.constant 2 : index
    %18 = vector.load %arg5[%c0_18, %c0_19, %c0_20, %c2] : memref<1x1x8x176xbf16, #tpu.memory_space<vmem>>, vector<1x1x8x128xbf16>
    %19 = vector.shape_cast %18 : vector<1x1x8x128xbf16> to vector<8x128xbf16>
    %c2_21 = arith.constant 2 : index
    %c0_22 = arith.constant 0 : index
    %20 = vector.load %arg4[%c2_21, %c0_22] : memref<3x128xbf16, #tpu.memory_space<vmem>>, vector<1x128xbf16>
    %21 = vector.broadcast %20 : vector<1x128xbf16> to vector<8x128xbf16>
    %22 = arith.mulf %19, %21 : vector<8x128xbf16>
    %c0_23 = arith.constant 0 : index
    %c2_24 = arith.constant 2 : index
    %c0_25 = arith.constant 0 : index
    %c0_26 = arith.constant 0 : index
    %23 = vector.load %arg2[%c0_23, %c2_24, %c0_25, %c0_26] : memref<1x9x8x8xf32, #tpu.memory_space<vmem>>, vector<1x1x8x8xf32>
    %24 = vector.shape_cast %23 : vector<1x1x8x8xf32> to vector<8x8xf32>
    %25 = arith.extf %22 : vector<8x128xbf16> to vector<8x128xf32>
    %cst_27 = arith.constant dense<0.000000e+00> : vector<8x128xf32>
    %26 = tpu.matmul %24, %25, %cst_27 {dimension_numbers = #tpu.dot_dimension_numbers<[1], [0], [0], [1], [0, 0, 1, 1], [], []>} : vector<8x8xf32>, vector<8x128xf32>, vector<8x128xf32> -> vector<8x128xf32>
    %27 = arith.addf %17, %26 : vector<8x128xf32>
    %c0_28 = arith.constant 0 : index
    %c0_29 = arith.constant 0 : index
    %c0_30 = arith.constant 0 : index
    %c16 = arith.constant 16 : index
    %28 = vector.load %arg5[%c0_28, %c0_29, %c0_30, %c16] : memref<1x1x8x176xbf16, #tpu.memory_space<vmem>>, vector<1x1x8x128xbf16>
    %29 = vector.shape_cast %28 : vector<1x1x8x128xbf16> to vector<8x128xbf16>
    %c0_31 = arith.constant 0 : index
    %c0_32 = arith.constant 0 : index
    %30 = vector.load %arg4[%c0_31, %c0_32] : memref<3x128xbf16, #tpu.memory_space<vmem>>, vector<1x128xbf16>
    %31 = vector.broadcast %30 : vector<1x128xbf16> to vector<8x128xbf16>
    %32 = arith.mulf %29, %31 : vector<8x128xbf16>
    %c0_33 = arith.constant 0 : index
    %c3 = arith.constant 3 : index
    %c0_34 = arith.constant 0 : index
    %c0_35 = arith.constant 0 : index
    %33 = vector.load %arg2[%c0_33, %c3, %c0_34, %c0_35] : memref<1x9x8x8xf32, #tpu.memory_space<vmem>>, vector<1x1x8x8xf32>
    %34 = vector.shape_cast %33 : vector<1x1x8x8xf32> to vector<8x8xf32>
    %35 = arith.extf %32 : vector<8x128xbf16> to vector<8x128xf32>
    %cst_36 = arith.constant dense<0.000000e+00> : vector<8x128xf32>
    %36 = tpu.matmul %34, %35, %cst_36 {dimension_numbers = #tpu.dot_dimension_numbers<[1], [0], [0], [1], [0, 0, 1, 1], [], []>} : vector<8x8xf32>, vector<8x128xf32>, vector<8x128xf32> -> vector<8x128xf32>
    %37 = arith.addf %27, %36 : vector<8x128xf32>
    %c0_37 = arith.constant 0 : index
    %c0_38 = arith.constant 0 : index
    %c0_39 = arith.constant 0 : index
    %c17 = arith.constant 17 : index
    %38 = vector.load %arg5[%c0_37, %c0_38, %c0_39, %c17] : memref<1x1x8x176xbf16, #tpu.memory_space<vmem>>, vector<1x1x8x128xbf16>
    %39 = vector.shape_cast %38 : vector<1x1x8x128xbf16> to vector<8x128xbf16>
    %c0_40 = arith.constant 0 : index
    %c4 = arith.constant 4 : index
    %c0_41 = arith.constant 0 : index
    %c0_42 = arith.constant 0 : index
    %40 = vector.load %arg2[%c0_40, %c4, %c0_41, %c0_42] : memref<1x9x8x8xf32, #tpu.memory_space<vmem>>, vector<1x1x8x8xf32>
    %41 = vector.shape_cast %40 : vector<1x1x8x8xf32> to vector<8x8xf32>
    %42 = arith.extf %39 : vector<8x128xbf16> to vector<8x128xf32>
    %cst_43 = arith.constant dense<0.000000e+00> : vector<8x128xf32>
    %43 = tpu.matmul %41, %42, %cst_43 {dimension_numbers = #tpu.dot_dimension_numbers<[1], [0], [0], [1], [0, 0, 1, 1], [], []>} : vector<8x8xf32>, vector<8x128xf32>, vector<8x128xf32> -> vector<8x128xf32>
    %44 = arith.addf %37, %43 : vector<8x128xf32>
    %c0_44 = arith.constant 0 : index
    %c0_45 = arith.constant 0 : index
    %c0_46 = arith.constant 0 : index
    %c18 = arith.constant 18 : index
    %45 = vector.load %arg5[%c0_44, %c0_45, %c0_46, %c18] : memref<1x1x8x176xbf16, #tpu.memory_space<vmem>>, vector<1x1x8x128xbf16>
    %46 = vector.shape_cast %45 : vector<1x1x8x128xbf16> to vector<8x128xbf16>
    %c2_47 = arith.constant 2 : index
    %c0_48 = arith.constant 0 : index
    %47 = vector.load %arg4[%c2_47, %c0_48] : memref<3x128xbf16, #tpu.memory_space<vmem>>, vector<1x128xbf16>
    %48 = vector.broadcast %47 : vector<1x128xbf16> to vector<8x128xbf16>
    %49 = arith.mulf %46, %48 : vector<8x128xbf16>
    %c0_49 = arith.constant 0 : index
    %c5 = arith.constant 5 : index
    %c0_50 = arith.constant 0 : index
    %c0_51 = arith.constant 0 : index
    %50 = vector.load %arg2[%c0_49, %c5, %c0_50, %c0_51] : memref<1x9x8x8xf32, #tpu.memory_space<vmem>>, vector<1x1x8x8xf32>
    %51 = vector.shape_cast %50 : vector<1x1x8x8xf32> to vector<8x8xf32>
    %52 = arith.extf %49 : vector<8x128xbf16> to vector<8x128xf32>
    %cst_52 = arith.constant dense<0.000000e+00> : vector<8x128xf32>
    %53 = tpu.matmul %51, %52, %cst_52 {dimension_numbers = #tpu.dot_dimension_numbers<[1], [0], [0], [1], [0, 0, 1, 1], [], []>} : vector<8x8xf32>, vector<8x128xf32>, vector<8x128xf32> -> vector<8x128xf32>
    %54 = arith.addf %44, %53 : vector<8x128xf32>
    %c0_53 = arith.constant 0 : index
    %c0_54 = arith.constant 0 : index
    %c0_55 = arith.constant 0 : index
    %c32 = arith.constant 32 : index
    %55 = vector.load %arg5[%c0_53, %c0_54, %c0_55, %c32] : memref<1x1x8x176xbf16, #tpu.memory_space<vmem>>, vector<1x1x8x128xbf16>
    %56 = vector.shape_cast %55 : vector<1x1x8x128xbf16> to vector<8x128xbf16>
    %c0_56 = arith.constant 0 : index
    %c0_57 = arith.constant 0 : index
    %57 = vector.load %arg4[%c0_56, %c0_57] : memref<3x128xbf16, #tpu.memory_space<vmem>>, vector<1x128xbf16>
    %58 = vector.broadcast %57 : vector<1x128xbf16> to vector<8x128xbf16>
    %59 = arith.mulf %56, %58 : vector<8x128xbf16>
    %c0_58 = arith.constant 0 : index
    %c6 = arith.constant 6 : index
    %c0_59 = arith.constant 0 : index
    %c0_60 = arith.constant 0 : index
    %60 = vector.load %arg2[%c0_58, %c6, %c0_59, %c0_60] : memref<1x9x8x8xf32, #tpu.memory_space<vmem>>, vector<1x1x8x8xf32>
    %61 = vector.shape_cast %60 : vector<1x1x8x8xf32> to vector<8x8xf32>
    %62 = arith.extf %59 : vector<8x128xbf16> to vector<8x128xf32>
    %cst_61 = arith.constant dense<0.000000e+00> : vector<8x128xf32>
    %63 = tpu.matmul %61, %62, %cst_61 {dimension_numbers = #tpu.dot_dimension_numbers<[1], [0], [0], [1], [0, 0, 1, 1], [], []>} : vector<8x8xf32>, vector<8x128xf32>, vector<8x128xf32> -> vector<8x128xf32>
    %64 = arith.addf %54, %63 : vector<8x128xf32>
    %c0_62 = arith.constant 0 : index
    %c0_63 = arith.constant 0 : index
    %c0_64 = arith.constant 0 : index
    %c33 = arith.constant 33 : index
    %65 = vector.load %arg5[%c0_62, %c0_63, %c0_64, %c33] : memref<1x1x8x176xbf16, #tpu.memory_space<vmem>>, vector<1x1x8x128xbf16>
    %66 = vector.shape_cast %65 : vector<1x1x8x128xbf16> to vector<8x128xbf16>
    %c0_65 = arith.constant 0 : index
    %c7 = arith.constant 7 : index
    %c0_66 = arith.constant 0 : index
    %c0_67 = arith.constant 0 : index
    %67 = vector.load %arg2[%c0_65, %c7, %c0_66, %c0_67] : memref<1x9x8x8xf32, #tpu.memory_space<vmem>>, vector<1x1x8x8xf32>
    %68 = vector.shape_cast %67 : vector<1x1x8x8xf32> to vector<8x8xf32>
    %69 = arith.extf %66 : vector<8x128xbf16> to vector<8x128xf32>
    %cst_68 = arith.constant dense<0.000000e+00> : vector<8x128xf32>
    %70 = tpu.matmul %68, %69, %cst_68 {dimension_numbers = #tpu.dot_dimension_numbers<[1], [0], [0], [1], [0, 0, 1, 1], [], []>} : vector<8x8xf32>, vector<8x128xf32>, vector<8x128xf32> -> vector<8x128xf32>
    %71 = arith.addf %64, %70 : vector<8x128xf32>
    %c0_69 = arith.constant 0 : index
    %c0_70 = arith.constant 0 : index
    %c0_71 = arith.constant 0 : index
    %c34 = arith.constant 34 : index
    %72 = vector.load %arg5[%c0_69, %c0_70, %c0_71, %c34] : memref<1x1x8x176xbf16, #tpu.memory_space<vmem>>, vector<1x1x8x128xbf16>
    %73 = vector.shape_cast %72 : vector<1x1x8x128xbf16> to vector<8x128xbf16>
    %c2_72 = arith.constant 2 : index
    %c0_73 = arith.constant 0 : index
    %74 = vector.load %arg4[%c2_72, %c0_73] : memref<3x128xbf16, #tpu.memory_space<vmem>>, vector<1x128xbf16>
    %75 = vector.broadcast %74 : vector<1x128xbf16> to vector<8x128xbf16>
    %76 = arith.mulf %73, %75 : vector<8x128xbf16>
    %c0_74 = arith.constant 0 : index
    %c8 = arith.constant 8 : index
    %c0_75 = arith.constant 0 : index
    %c0_76 = arith.constant 0 : index
    %77 = vector.load %arg2[%c0_74, %c8, %c0_75, %c0_76] : memref<1x9x8x8xf32, #tpu.memory_space<vmem>>, vector<1x1x8x8xf32>
    %78 = vector.shape_cast %77 : vector<1x1x8x8xf32> to vector<8x8xf32>
    %79 = arith.extf %76 : vector<8x128xbf16> to vector<8x128xf32>
    %cst_77 = arith.constant dense<0.000000e+00> : vector<8x128xf32>
    %80 = tpu.matmul %78, %79, %cst_77 {dimension_numbers = #tpu.dot_dimension_numbers<[1], [0], [0], [1], [0, 0, 1, 1], [], []>} : vector<8x8xf32>, vector<8x128xf32>, vector<8x128xf32> -> vector<8x128xf32>
    %81 = arith.addf %71, %80 : vector<8x128xf32>
    %c0_78 = arith.constant 0 : index
    %c0_79 = arith.constant 0 : index
    %82 = vector.load %arg3[%c0_78, %c0_79] : memref<8x1xf32, #tpu.memory_space<vmem>>, vector<8x1xf32>
    %83 = vector.broadcast %82 : vector<8x1xf32> to vector<8x128xf32>
    %84 = arith.addf %81, %83 : vector<8x128xf32>
    %c0_80 = arith.constant 0 : index
    %c0_81 = arith.constant 0 : index
    %c0_82 = arith.constant 0 : index
    %85 = vector.load %arg6[%c0_80, %c0_81, %c0_82] : memref<1x8x128xf32, #tpu.memory_space<vmem>>, vector<1x8x128xf32>
    %86 = vector.shape_cast %85 : vector<1x8x128xf32> to vector<8x128xf32>
    %87 = vector.shape_cast %84 : vector<8x128xf32> to vector<1x8x128xf32>
    tpu.vector_store %arg6[%c0_80, %c0_81, %c0_82], %87 {strides = array<i32>} : memref<1x8x128xf32, #tpu.memory_space<vmem>>, vector<1x8x128xf32>,
    return
  }
  func.func @transform_0(%arg0: i32, %arg1: i32) -> (i32, i32, i32, i32) {
    %c0_i32 = arith.constant 0 : i32
    %c0_i32_0 = arith.constant 0 : i32
    %c0_i32_1 = arith.constant 0 : i32
    %c0_i32_2 = arith.constant 0 : i32
    return %arg0, %c0_i32, %c0_i32_0, %c0_i32_1 : i32, i32, i32, i32
  }
  func.func @transform_1(%arg0: i32, %arg1: i32) -> (i32, i32) {
    %c0_i32 = arith.constant 0 : i32
    %c0_i32_0 = arith.constant 0 : i32
    %c0_i32_1 = arith.constant 0 : i32
    return %c0_i32, %c0_i32_0 : i32, i32
  }
  func.func @transform_2(%arg0: i32, %arg1: i32) -> (i32, i32) {
    %c0_i32 = arith.constant 0 : i32
    %c0_i32_0 = arith.constant 0 : i32
    %c0_i32_1 = arith.constant 0 : i32
    return %c0_i32, %c0_i32_0 : i32, i32
  }
  func.func @transform_3(%arg0: i32, %arg1: i32) -> (i32, i32, i32, i32) {
    %c0_i32 = arith.constant 0 : i32
    %c0_i32_0 = arith.constant 0 : i32
    %c0_i32_1 = arith.constant 0 : i32
    return %arg0, %arg1, %c0_i32, %c0_i32_0 : i32, i32, i32, i32
  }
  func.func @transform_4(%arg0: i32, %arg1: i32) -> (i32, i32, i32) {
    %c0_i32 = arith.constant 0 : i32
    %c0_i32_0 = arith.constant 0 : i32
    return %arg0, %c0_i32, %arg1 : i32, i32, i32
  }
}

</mosaic_0001>

<bundles_post_ra>
// kernel: adjustable_convolution_2d.1
= control target key start
LH: loop header
LB: loop body
LE: loop exit
PB: predicated region body
PF: predicated region fallthrough
CT: control target
= control target key end

     0   :  { %s934_s15 = smov 0   ;;  %s936_s16 = smov 0   ;;  %s1043_s0 = inlined_call_operand.vmem [shape: f32[2,9,8,8], index: 0, kind: input, shape index: {}]   ;;  %s1044_s1 = inlined_call_operand.vmem [shape: f32[8,1], index: 1, kind: input, shape index: {}]   ;;  %s1045_s2 = inlined_call_operand.vmem [shape: bf16[3,128], index: 2, kind: input, shape index: {}]   ;;  %s1046_s3 = inlined_call_operand.vmem [shape: bf16[2,2,8,176], index: 3, kind: input, shape index: {}]   ;;  %s1047_s4 = inlined_call_operand.vmem [shape: f32[2,8,256], index: 4, kind: output, shape index: {}]  }
   0x1   :  { %s938_s17 = smov 0   ;;  %s940_s18 = smov 0  }
   0x2   :  { %s942_s19 = smov 0  }
   0x3 LB: > { %s23_s20 = sadd.s32 1, %s885_s17  ;;  %s26_s21 = sadd.s32 1, %s889_s18  ;;  %s893_s19 = sphi %s942_s19, %s14_s19   ;;  %s889_s18 = sphi %s940_s18, %s1051_s18   ;;  %s885_s17 = sphi %s938_s17, %s1050_s17   ;;  %s881_s16 = sphi %s936_s16, %s1049_s16   ;;  %s877_s15 = sphi %s934_s15, %s1048_s15  }
   0x4   : > { %p24_p0 = scmp.ge.s32.totalorder %s23_s20, 2  ;;  %p732_p1 = scmp.ge.s32.totalorder %s893_s19, 1 }
   0x5   : > { %p192_p2 = scmp.lt.s32.totalorder %s893_s19, 5 }
   0x6   : > { %s1053_s20 = smov (%p24_p0, %s23_s20), 0  ;;  %s1055_s21 = smov (!%p24_p0, %s26_s21), %s889_s18 }
   0x7   : > { %p193_p3 = pnand %p732_p1, %p192_p2  ;;  %p28_p4 = scmp.ge.s32.totalorder %s1055_s21, 2 }
   0x8   : > { %s895_s26 = smov (!%p193_p3), 2   ;;  %s896_s27 = smov (!%p193_p3), 32  }
   0x9   : > { %s1057_s21 = smov (%p28_p4, %s1055_s21), 0  ;;  %196 = sbr.rel (%p193_p3) target bundleno = 414 (0x19e), region = 36 }
   0xa   : > { %s897_s28 = smov (!%p193_p3), 34   ;;  %s898_s29 = smov (!%p193_p3), 16  }
   0xb   : > { %s899_s30 = smov (!%p193_p3), 18   ;;  %p230_p5 = scmp.lt.s32.totalorder (!%p193_p3), %s881_s16, 1 }
   0xc   : > { %p237_p6 = scmp.lt.s32.totalorder (!%p193_p3), %s877_s15, 1  ;;  %s900_s12 = smov (!%p193_p3), 127  }
   0xd   : > { %s901_s13 = smov (!%p193_p3), 111   ;;  %s902_s14 = smov (!%p193_p3), 94  }
   0xe   : > { %v325_v0 = vld [vmem:[%s1045_s2] sm:$0x2]  ;;  %v253_v1 = vld [vmem:[%s1045_s2] sm:$0x1]  ;;  %s1059_s16 = smov (!%p230_p5, %s881_s16), 1  ;;  %s1061_s15 = smov (!%p237_p6, %s877_s15), 1 }
   0xf   : > { %v327_v2 = vpack.i.b16 %v325_v0, %v325_v0  ;;  %v255_v3 = vpack.i.b16 %v253_v1, %v253_v1  ;;  %s734_s5 = sshll.u32 %s1061_s15, 1  ;;  %s735_s6 = sshll.u32 %s1059_s16, 2  ;;  %vm349_vm0 = vcmask 1031168   ;;  %vm275_vm1 = vcmask 1039360   ;;  %v619_v56 = vld [vmem:[%s1044_s1] sm:$0xff] }
  0x10   : > { %s241_s7 = sadd.s32 %s735_s6, %s734_s5  ;;  %s903_s22 = smov 126   ;;  %vm278_vm2 = vcmask 64512   ;;  %vm515_vm3 = vcmask 785408   ;;  %vm427_vm4 = vcmask 908288   ;;  %vm592_vm5 = vcmask 769024  }
  0x11   : > { %v329_v4 = vperm.slane %v327_v2, 1  ;;  %v257_v5 = vperm.slane %v255_v3, 0  ;;  %s736_s8 = sshll.u32 %s241_s7, 2  ;;  %s904_s23 = smov 112   ;;  %v908_v58 = vmov 0   ;;  %vm471_vm6 = vcmask 900096  }
  0x12   : > { %s991_s11 = scalar_lea.vmem %s1046_s3, %s736_s8  ;;  %s905_s24 = smov 96   ;;  %853 = vset.pattern.permute.xlu1 %v908_v58  ;;  %854 = vset.pattern.permute.xlu0 %v908_v58  ;;  %vm394_vm7 = vcmask 916480   ;;  %vm548_vm8 = vcmask 777216  }
  0x13   : > { %v330_v6 = vunpack.c.l.bf16 %v329_v4  ;;  %v974_v7 = vunpack.c.l.bf16 %v257_v5  ;;  %v264_v8 = vld [vmem:[%s991_s11] sm:$0xff]  ;;  %s906_s25 = smov 95   ;;  %s737_s7 = sshll.u32 %s1059_s16, 1 }
  0x14   : > { %v267_v9 = vunpack.c.l.bf16 %v264_v8  ;;  %v268_v10 = vunpack.c.h.bf16 %v264_v8  ;;  %v252_v35 = vld [vmem:[%s991_s11] sm:$0xf]  ;;  %s249_s8 = sadd.s32 %s737_s7, %s1061_s15 }
  0x15   : > { %332 = vrot.lane.b32.xlu0 %v330_v6, %s895_s26  ;;  %498 = vrot.lane.b32.xlu1 %v974_v7, %s896_s27  ;;  %s907_s26 = smov 110   ;;  %s758_s27 = smul.u32 72, %s1059_s16  ;;  %v258_v37 = vunpack.c.l.bf16 %v252_v35 }
  0x16   : > { %575 = vrot.lane.b32.xlu2 %v330_v6, %s897_s28  ;;  %v813_v11 = vpack.i.bf16 %v268_v10, %v267_v9  ;;  %s738_s9 = sshll.u32 %s249_s8, 3 }
  0x17   : > { %v260_v42 = vmul.f32 %v974_v7, %v258_v37 }
  0x19   : > { %320 = vmatpush.msra.mxu1 %v260_v42 }
  0x1d   : > { %377 = vrot.lane.b32.xlu0 %v974_v7, %s898_s29  ;;  %454 = vrot.lane.b32.xlu1 %v330_v6, %s899_s30  ;;  %s998_s30 = scalar_lea.vmem %s1043_s0, %s758_s27 }
  0x1e   : > { %v742_v41 = vld [vmem:[%s998_s30 + $0x10] sm:$0xff]  ;;  %v739_v44 = vld [vmem:[%s998_s30 + $0x8] sm:$0xff]  ;;  %v262_v45 = vld [vmem:[%s998_s30] sm:$0xff] }
  0x1f   : > { %741 = vmatmul.msk.f32.vlgmr.msra.gmra.mxu1 %vm278_vm2, %v262_v45  ;;  %v750_v53 = vld [vmem:[%s998_s30 + $0x30] sm:$0xff]  ;;  %v746_v55 = vld [vmem:[%s998_s30 + $0x20] sm:$0xff]  ;;  %v748_v1 = vld [vmem:[%s998_s30 + $0x28] sm:$0xff] }
  0x20   : > { %v754_v2 = vld [vmem:[%s998_s30 + $0x40] sm:$0xff]  ;;  %v744_v7 = vld [vmem:[%s998_s30 + $0x18] sm:$0xff] }
  0x25   : > { %814 = vrot.lane.b32.xlu0 %v813_v11, %s900_s12  ;;  %s251_s12 = scalar_lea.vmem %s1047_s4, %s738_s9 }
  0x2d   : > { %819 = vrot.lane.b32.xlu0 %v813_v11, %s901_s13 }
  0x70   : > { %v576_v12 = vpop.permute.xlu2 %575 }
  0x71   : > { %v578_v13 = vmul.f32 %v576_v12, %v267_v9  ;;  %v579_v14 = vmul.f32 %v576_v12, %v268_v10  ;;  %v752_v12 = vld [vmem:[%s998_s30 + $0x38] sm:$0xff] }
  0x73   : > { %v848_v15 = vpack.i.bf16 %v579_v14, %v578_v13 }
  0x75   : > { %849 = vrot.lane.b32.xlu0 %v848_v15, %s902_s14 }
  0x87   : > { %v333_v16 = vpop.permute.xlu0 %332  ;;  %v499_v17 = vpop.permute.xlu1 %498 }
  0x88   : > { %v335_v18 = vmul.f32 %v333_v16, %v267_v9  ;;  %v336_v19 = vmul.f32 %v333_v16, %v268_v10  ;;  %v501_v20 = vmul.f32 %v499_v17, %v267_v9  ;;  %v502_v21 = vmul.f32 %v499_v17, %v268_v10 }
  0x8a   : > { %v823_v22 = vpack.i.bf16 %v336_v19, %v335_v18  ;;  %v838_v29 = vpack.i.bf16 %v502_v21, %v501_v20 }
  0x8c   : > { %824 = vrot.lane.b32.xlu2 %v823_v22, %s903_s22 }
  0x8f   : > { %v378_v23 = vpop.permute.xlu0 %377  ;;  %v455_v24 = vpop.permute.xlu1 %454 }
  0x90   : > { %v380_v25 = vmul.f32 %v378_v23, %v267_v9  ;;  %v381_v26 = vmul.f32 %v378_v23, %v268_v10  ;;  %v457_v27 = vmul.f32 %v455_v24, %v267_v9  ;;  %v458_v28 = vmul.f32 %v455_v24, %v268_v10 }
  0x92   : > { %v828_v30 = vpack.i.bf16 %v381_v26, %v380_v25  ;;  %v843_v31 = vpack.i.bf16 %v458_v28, %v457_v27 }
  0x94   : > { %829 = vrot.lane.b32.xlu1 %v828_v30, %s904_s23  ;;  %839 = vrot.lane.b32.xlu2 %v838_v29, %s905_s24 }
  0x97   : > { %v815_v32 = vpop.permute.xlu0 %814 }
  0x98   : > { %v817_v33 = vunpack.i.h.bf16 %v815_v32  ;;  %v816_v34 = vunpack.i.l.bf16 %v815_v32 }
  0x9a   : > { %v276_v40 = vsel %vm275_vm1, %v816_v34, %v817_v33 }
  0x9b   : > { %297 = vmatpush.msra.mxu0 %v276_v40 }
  0x9c   : > { %834 = vrot.lane.b32.xlu1 %v813_v11, %s906_s25  ;;  %844 = vrot.lane.b32.xlu2 %v843_v31, %s907_s26  ;;  %v322_v15 = vpop.f32.mrf.mxu1 }
  0x9d   : > { %740 = vmatmul.msk.f32.vlgmr.msra.gmra.mxu0 %vm278_vm2, %v739_v44 }
  0x9f   : > { %v820_v46 = vpop.permute.xlu0 %819 }
  0xa0   : > { %v822_v47 = vunpack.i.h.bf16 %v820_v46  ;;  %v821_v48 = vunpack.i.l.bf16 %v820_v46 }
  0xa2   : > { %v428_v52 = vsel %vm427_vm4, %v821_v48, %v822_v47 }
  0xa3   : > { %448 = vmatpush.msrb.mxu0 %v428_v52 }
  0xa4   : > { %622 = vperm.xlu1 %853, %v619_v56  }
  0xa5   : > { %747 = vmatmul.msk.f32.vlgmr.msrb.gmra.mxu0 %vm278_vm2, %v746_v55 }
  0xe6   : > { %v825_v36 = vpop.permute.xlu2 %824 }
  0xe7   : > { %v827_v38 = vunpack.i.h.bf16 %v825_v36  ;;  %v826_v39 = vunpack.i.l.bf16 %v825_v36  ;;  %v850_v57 = vpop.permute.xlu0 %849 }
  0xe8   : > { %v852_v59 = vunpack.i.h.bf16 %v850_v57  ;;  %v851_v60 = vunpack.i.l.bf16 %v850_v57 }
  0xe9   : > { %v350_v43 = vsel %vm349_vm0, %v826_v39, %v827_v38 }
  0xea   : > { %370 = vmatpush.msra.mxu2 %v350_v43  ;;  %v593_v0 = vsel %vm592_vm5, %v851_v60, %v852_v59 }
  0xeb   : > { %743 = vmatmul.msk.f32.vlgmr.msra.gmra.mxu2 %vm278_vm2, %v742_v41  ;;  %613 = vmatpush.msra.mxu0 %v593_v0 }
  0xec   : > { %755 = vmatmul.msk.f32.vlgmr.msra.gmra.mxu0 %vm278_vm2, %v754_v2 }
  0xee   : > { %v840_v49 = vpop.permute.xlu2 %839 }
  0xef   : > { %v842_v50 = vunpack.i.h.bf16 %v840_v49  ;;  %v841_v51 = vunpack.i.l.bf16 %v840_v49 }
  0xf1   : > { %v516_v54 = vsel %vm515_vm3, %v841_v51, %v842_v50 }
  0xf2   : > { %536 = vmatpush.msrb.mxu2 %v516_v54 }
  0xf3   : > { %751 = vmatmul.msk.f32.vlgmr.msrb.gmra.mxu2 %vm278_vm2, %v750_v53 }
  0xf6   : > { %v845_v61 = vpop.permute.xlu2 %844 }
  0xf7   : > { %v847_v62 = vunpack.i.h.bf16 %v845_v61  ;;  %v846_v63 = vunpack.i.l.bf16 %v845_v61 }
  0xf9   : > { %v472_v3 = vsel %vm471_vm6, %v846_v63, %v847_v62 }
  0xfa   : > { %492 = vmatpush.msrb.mxu1 %v472_v3 }
  0xfb   : > { %749 = vmatmul.msk.f32.vlgmr.msrb.gmra.mxu1 %vm278_vm2, %v748_v1 }
 0x106   : > { %v830_v4 = vpop.permute.xlu1 %829 }
 0x107   : > { %v832_v5 = vunpack.i.h.bf16 %v830_v4  ;;  %v831_v6 = vunpack.i.l.bf16 %v830_v4 }
 0x109   : > { %v395_v8 = vsel %vm394_vm7, %v831_v6, %v832_v5 }
 0x10a   : > { %415 = vmatpush.msra.mxu3 %v395_v8 }
 0x10b   : > { %745 = vmatmul.msk.f32.vlgmr.msra.gmra.mxu3 %vm278_vm2, %v744_v7 }
 0x10e   : > { %v835_v9 = vpop.permute.xlu1 %834 }
 0x10f   : > { %v837_v10 = vunpack.i.h.bf16 %v835_v9  ;;  %v836_v11 = vunpack.i.l.bf16 %v835_v9 }
 0x111   : > { %v549_v13 = vsel %vm548_vm8, %v836_v11, %v837_v10 }
 0x112   : > { %569 = vmatpush.msrb.mxu3 %v549_v13 }
 0x113   : > { %753 = vmatmul.msk.f32.vlgmr.msrb.gmra.mxu3 %vm278_vm2, %v752_v12 }
 0x116   : > { %v623_v30 = vpop.permute.xlu1 %622 }
 0x11a   : > { %v299_v14 = vpop.f32.mrf.mxu0 }
 0x11b   : > { %v323_v16 = vadd.f32 %v322_v15, %v299_v14 }
 0x122   : > { %v450_v18 = vpop.f32.mrf.mxu0 }
 0x169   : > { %v615_v28 = vpop.f32.mrf.mxu0 }
 0x16e   : > { %v372_v17 = vpop.f32.mrf.mxu2 }
 0x16f   : > { %v375_v19 = vadd.f32 %v372_v17, %v323_v16 }
 0x176   : > { %v538_v24 = vpop.f32.mrf.mxu2 }
 0x178   : > { %v494_v22 = vpop.f32.mrf.mxu1 }
 0x18e   : > { %v417_v20 = vpop.f32.mrf.mxu3 }
 0x18f   : > { %v420_v21 = vadd.f32 %v417_v20, %v375_v19 }
 0x191   : > { %v453_v23 = vadd.f32 %v450_v18, %v420_v21 }
 0x193   : > { %v497_v25 = vadd.f32 %v494_v22, %v453_v23 }
 0x195   : > { %v541_v26 = vadd.f32 %v538_v24, %v497_v25 }
 0x196   : > { %v571_v27 = vpop.f32.mrf.mxu3 }
 0x197   : > { %v574_v29 = vadd.f32 %v571_v27, %v541_v26 }
 0x199   : > { %v618_v31 = vadd.f32 %v615_v28, %v574_v29 }
 0x19b   : > { %v625_v32 = vadd.f32 %v623_v30, %v618_v31 }
 0x19d   : > { %626 = vst [vmem:[%s251_s12] sm:$0xff] %v625_v32 }
 0x19e PF: > { %s14_s19 = sadd.s32 1, %s893_s19   ;;  %s1048_s15 = smov %s885_s17 }
 0x19f   : > { %p11_p7 = scmp.ge.s32.totalorder %s14_s19, 6   ;;  %s1049_s16 = smov %s889_s18 }
 0x1a0   : > { %s1050_s17 = smov %s1053_s20  ;;  %s1051_s18 = smov %s1057_s21 }
 0x1a1   :  { %13 = sbr.rel (!%p11_p7) target bundleno = 3 (0x3), region = 77 }

</bundles_post_ra>
